<compile_context>
chip_gen: v7x
topology: tpu7x:2x2x1
jax: 0.10.0
libtpu: 0.0.40
codegen_flags: <defaults>
</compile_context>

<pallas_src>
import functools

import jax
import jax.numpy as jnp
from jax.experimental import pallas as pl
from jax.experimental.pallas import tpu as pltpu

C_OUT = 64     # conv1 out_channels
K = 3          # conv1 kernel_size
HIDDEN = 128   # first Linear width
LANE = 128     # TPU lane width


def _round_up(n, m):
    return ((n + m - 1) // m) * m


def fused_kernel(x_ref, wt_ref, w1_ref, b1_ref, w2_ref, b2_ref, o_ref, *, half):
    """conv1d(K=3)+bias+ReLU+MaxPool1d(2)+flatten+Linear/Sigmoid x2, fused.

    The conv is a single block-Toeplitz MXU matmul; its output columns are
    [even-time block | odd-time block], each block already in the torch
    .view() flatten order and padded to a 128-lane boundary, so ReLU + pool +
    flatten reduce to one relu, one lane-aligned split and one max -- no
    concatenates, strided slices or reshape relayouts in the kernel.
    """
    conv = jnp.dot(x_ref[...], wt_ref[...], preferred_element_type=jnp.float32)
    conv = jnp.maximum(conv, 0.0)                        # bias folded into wt; ReLU
    feat = jnp.maximum(conv[:, :half], conv[:, half:])   # MaxPool1d(2) + flatten
    h = jnp.dot(feat, w1_ref[...], preferred_element_type=jnp.float32)
    h = jax.nn.sigmoid(h + b1_ref[...])
    y = jnp.dot(h, w2_ref[...], preferred_element_type=jnp.float32)
    o_ref[...] = jax.nn.sigmoid(y + b2_ref[...])
    # TODO(synk): once B (matmul M dim) is large enough to fill the MXU, cast
    # matmul operands to bf16 (f32 accumulation) on v6e/v7x for ~2x MXU rate.


def init_params(key, input_size, feature_size, num_classes):
    """Torch-convention params mimicking BaseModel.init_weights
    (kaiming-normal weights, zero biases)."""
    l_pool = (feature_size - 2) // 2
    hidden_in = C_OUT * l_pool
    k1, k2, k3 = jax.random.split(key, 3)
    conv_w = jax.random.normal(k1, (C_OUT, input_size, K), jnp.float32) * jnp.sqrt(
        2.0 / (input_size * K))                          # (C_OUT, C_in, K)
    conv_b = jnp.zeros((C_OUT,), jnp.float32)
    w1 = jax.random.normal(k2, (HIDDEN, hidden_in), jnp.float32) * jnp.sqrt(
        2.0 / hidden_in)                                 # (128, hidden_in)
    b1 = jnp.zeros((HIDDEN,), jnp.float32)
    w2 = jax.random.normal(k3, (num_classes, HIDDEN), jnp.float32) * jnp.sqrt(
        2.0 / HIDDEN)                                    # (num_classes, 128)
    b2 = jnp.zeros((num_classes,), jnp.float32)
    return conv_w, conv_b, w1, b1, w2, b2


def prepare_kernel_params(params, *, feature_size, num_classes):
    """One-time (model-load) layout prep.

    * Block-Toeplitz conv weight wt: (rows, 2*half).  Column c*l_pool + p
      (+ e*half) produces conv output channel c at time t = 2p + e, so the
      column order inside each half equals torch's .view() flatten order.
      Conv bias is folded in via a ones row at index c_in*L.
    * W1: rows zero-padded from (C_OUT*l_pool, 128) to (half, 128).
    * W2/b2: padded to 128 output lanes; padded biases are very negative so
      the padded lanes land near 0 instead of sigmoid(0)=0.5.
    """
    conv_w, conv_b, w1, b1, w2, b2 = params
    c_in = conv_w.shape[1]
    L = feature_size
    l_out = L - (K - 1)
    l_pool = l_out // 2
    assert l_pool >= 1
    n_feat = C_OUT * l_pool
    half = _round_up(n_feat, LANE)           # lane-aligned split point for the pool
    rows = _round_up(c_in * L + 1, LANE)     # +1 ones-row carrying the conv bias

    wt = jnp.zeros((rows, 2 * half), jnp.float32)
    c_ids = jnp.arange(C_OUT)[:, None]                   # (C_OUT, 1)
    p_ids = jnp.arange(l_pool)[None, :]                  # (1, l_pool)
    cols_base = c_ids * l_pool + p_ids                   # (C_OUT, l_pool)
    for e in range(2):                                   # even / odd time step
        for k in range(K):
            for ci in range(c_in):
                rows_idx = ci * L + 2 * p_ids + e + k            # (1, l_pool)
                rows_b = jnp.broadcast_to(rows_idx, (C_OUT, l_pool))
                vals = jnp.broadcast_to(conv_w[:, ci, k][:, None],
                                        (C_OUT, l_pool))
                wt = wt.at[rows_b, cols_base + e * half].set(vals)
    # Conv bias via the ones row (index c_in*L); padded columns stay zero.
    cb = jnp.repeat(conv_b, l_pool)                      # order c*l_pool + p
    bias_row = jnp.zeros((2 * half,), jnp.float32)
    bias_row = bias_row.at[:n_feat].set(cb).at[half:half + n_feat].set(cb)
    wt = wt.at[c_in * L, :].set(bias_row)

    w1k = jnp.zeros((half, HIDDEN), jnp.float32).at[:n_feat, :].set(w1.T)
    b1k = b1.reshape(1, HIDDEN)

    n_pad = _round_up(num_classes, LANE)
    w2k = jnp.zeros((HIDDEN, n_pad), jnp.float32).at[:, :num_classes].set(w2.T)
    b2k = jnp.full((1, n_pad), -1e4, jnp.float32).at[:, :num_classes].set(b2)
    return wt, w1k, b1k, w2k, b2k


def conv1d_sigmoid_forward(x, kparams, *, input_size, feature_size, num_classes):
    wt, w1k, b1k, w2k, b2k = kparams
    B = x.shape[0]

    # Glue matching the PyTorch forward: slice channels, zero-pad back.
    x = x[:, :input_size]
    pad_c = input_size - x.shape[1]
    if pad_c > 0:
        x = jnp.concatenate(
            [x, jnp.zeros((B, pad_c, x.shape[2]), x.dtype)], axis=1)
    x = x.astype(jnp.float32)
    L = x.shape[2]
    assert L == feature_size

    rows = wt.shape[0]
    half = w1k.shape[0]
    n_pad = w2k.shape[1]

    # Channel-major flatten (c*L + t) straight from (B, C_in, L): no transpose.
    # Trailing pad is ones: row c_in*L of wt is the bias row; the remaining
    # padded rows of wt are zero, so ones there are harmless.
    x_flat = x.reshape(B, input_size * L)
    x_kern = jnp.concatenate(
        [x_flat, jnp.ones((B, rows - input_size * L), jnp.float32)], axis=1)

    # Batch as a parallel grid axis: collapses to grid=(1,) at toy B, streams
    # x/out blocks (weights VMEM-resident via constant index_maps) and shards
    # across the two TensorCores on v7x at large B.
    bt = B if B <= 128 else 128
    grid = (pl.cdiv(B, bt),)

    out_pad = pl.pallas_call(
        functools.partial(fused_kernel, half=half),
        out_shape=jax.ShapeDtypeStruct((B, n_pad), jnp.float32),
        grid=grid,
        in_specs=[
            pl.BlockSpec((bt, rows), lambda i: (i, 0)),          # x (streamed)
            pl.BlockSpec((rows, 2 * half), lambda i: (0, 0)),    # Toeplitz conv W
            pl.BlockSpec((half, HIDDEN), lambda i: (0, 0)),      # W1
            pl.BlockSpec((1, HIDDEN), lambda i: (0, 0)),         # b1
            pl.BlockSpec((HIDDEN, n_pad), lambda i: (0, 0)),     # W2
            pl.BlockSpec((1, n_pad), lambda i: (0, 0)),          # b2
        ],
        out_specs=pl.BlockSpec((bt, n_pad), lambda i: (i, 0)),
        compiler_params=pltpu.CompilerParams(
            dimension_semantics=("parallel",)),
    )(x_kern, wt, w1k, b1k, w2k, b2k)

    # Slice the 128-lane padded output back to num_classes.
    return out_pad[:, :num_classes]


def reference_forward(x, params, *, input_size, feature_size, num_classes):
    """Pure-JAX reference of the torch module, for in-script validation."""
    conv_w, conv_b, w1, b1, w2, b2 = params
    x = x[:, :input_size].astype(jnp.float32)
    L = x.shape[2]
    l_out = L - (K - 1)
    l_pool = l_out // 2
    acc = jnp.zeros((x.shape[0], C_OUT, l_out), jnp.float32)
    for k in range(K):
        acc += jnp.einsum('oc,bct->bot', conv_w[:, :, k], x[:, :, k:k + l_out])
    acc = jax.nn.relu(acc + conv_b[None, :, None])
    pooled = jnp.maximum(acc[:, :, 0:2 * l_pool:2], acc[:, :, 1:2 * l_pool:2])
    feat = pooled.reshape(x.shape[0], C_OUT * l_pool)     # torch .view order
    h = jax.nn.sigmoid(feat @ w1.T + b1)
    return jax.nn.sigmoid(h @ w2.T + b2)


if __name__ == "__main__":
    INPUT_SIZE = 4      # conv in_channels
    FEATURE_SIZE = 16   # spatial length L
    NUM_CLASSES = 10
    BATCH = 2

    key = jax.random.PRNGKey(0)
    kx, kp = jax.random.split(key)
    x = jax.random.normal(kx, (BATCH, INPUT_SIZE, FEATURE_SIZE), jnp.float32)
    params = init_params(kp, INPUT_SIZE, FEATURE_SIZE, NUM_CLASSES)
    kparams = prepare_kernel_params(params, feature_size=FEATURE_SIZE,
                                    num_classes=NUM_CLASSES)

    y = conv1d_sigmoid_forward(
        x, kparams,
        input_size=INPUT_SIZE, feature_size=FEATURE_SIZE, num_classes=NUM_CLASSES)
    y = jax.block_until_ready(y)

    assert y.shape == (BATCH, NUM_CLASSES)
    assert bool(jnp.all(jnp.isfinite(y)))
    assert bool(jnp.all((y >= 0.0) & (y <= 1.0)))
    y_ref = reference_forward(x, params, input_size=INPUT_SIZE,
                              feature_size=FEATURE_SIZE, num_classes=NUM_CLASSES)
    assert bool(jnp.allclose(y, y_ref, atol=1e-5, rtol=1e-5)), (
        float(jnp.max(jnp.abs(y - y_ref))))
    print("KERNEL_OK")
</pallas_src>

<mosaic_0001>
module attributes {stable_mosaic.version = 11 : i64} {
  func.func @fused_kernel(%arg0: i32, %arg1: memref<2x128xf32, #tpu.memory_space<vmem>>, %arg2: memref<128x1024xf32, #tpu.memory_space<vmem>>, %arg3: memref<512x128xf32, #tpu.memory_space<vmem>>, %arg4: memref<1x128xf32, #tpu.memory_space<vmem>>, %arg5: memref<128x128xf32, #tpu.memory_space<vmem>>, %arg6: memref<1x128xf32, #tpu.memory_space<vmem>>, %arg7: memref<2x128xf32, #tpu.memory_space<vmem>>) attributes {dimension_semantics = [#tpu.dimension_semantics<parallel>], iteration_bounds = array<i64: 1>, scalar_prefetch = 0 : i64, scratch_operands = 0 : i64, tpu.core_type = #tpu.core_type<tc>, window_params = [{transform_indices = @transform_0, window_bounds = array<i64: 2, 128>}, {pipeline_mode = #tpu.pipeline_mode<synchronous>, transform_indices = @transform_1, window_bounds = array<i64: 128, 1024>}, {pipeline_mode = #tpu.pipeline_mode<synchronous>, transform_indices = @transform_2, window_bounds = array<i64: 512, 128>}, {pipeline_mode = #tpu.pipeline_mode<synchronous>, transform_indices = @transform_3, window_bounds = array<i64: 1, 128>}, {pipeline_mode = #tpu.pipeline_mode<synchronous>, transform_indices = @transform_4, window_bounds = array<i64: 128, 128>}, {pipeline_mode = #tpu.pipeline_mode<synchronous>, transform_indices = @transform_5, window_bounds = array<i64: 1, 128>}, {transform_indices = @transform_6, window_bounds = array<i64: 2, 128>}]} {
    %c0 = arith.constant 0 : index
    %c0_0 = arith.constant 0 : index
    %0 = vector.load %arg1[%c0, %c0_0] : memref<2x128xf32, #tpu.memory_space<vmem>>, vector<2x128xf32>
    %c0_1 = arith.constant 0 : index
    %c0_2 = arith.constant 0 : index
    %1 = vector.load %arg2[%c0_1, %c0_2] : memref<128x1024xf32, #tpu.memory_space<vmem>>, vector<128x1024xf32>
    %cst = arith.constant dense<0.000000e+00> : vector<2x1024xf32>
    %2 = tpu.matmul %0, %1, %cst {dimension_numbers = #tpu.dot_dimension_numbers<[1], [0], [0], [1], [0, 0, 1, 1], [], []>} : vector<2x128xf32>, vector<128x1024xf32>, vector<2x1024xf32> -> vector<2x1024xf32>
    %cst_3 = arith.constant 0.000000e+00 : f32
    %3 = vector.broadcast %cst_3 : f32 to vector<2x1024xf32>
    %4 = arith.maximumf %2, %3 : vector<2x1024xf32>
    %5 = vector.extract_strided_slice %4 {offsets = [0, 0], sizes = [2, 512], strides = [1, 1]} : vector<2x1024xf32> to vector<2x512xf32>
    %6 = vector.extract_strided_slice %4 {offsets = [0, 512], sizes = [2, 512], strides = [1, 1]} : vector<2x1024xf32> to vector<2x512xf32>
    %7 = arith.maximumf %5, %6 : vector<2x512xf32>
    %c0_4 = arith.constant 0 : index
    %c0_5 = arith.constant 0 : index
    %8 = vector.load %arg3[%c0_4, %c0_5] : memref<512x128xf32, #tpu.memory_space<vmem>>, vector<512x128xf32>
    %cst_6 = arith.constant dense<0.000000e+00> : vector<2x128xf32>
    %9 = tpu.matmul %7, %8, %cst_6 {dimension_numbers = #tpu.dot_dimension_numbers<[1], [0], [0], [1], [0, 0, 1, 1], [], []>} : vector<2x512xf32>, vector<512x128xf32>, vector<2x128xf32> -> vector<2x128xf32>
    %c0_7 = arith.constant 0 : index
    %c0_8 = arith.constant 0 : index
    %10 = vector.load %arg4[%c0_7, %c0_8] : memref<1x128xf32, #tpu.memory_space<vmem>>, vector<1x128xf32>
    %11 = vector.broadcast %10 : vector<1x128xf32> to vector<2x128xf32>
    %12 = arith.addf %9, %11 : vector<2x128xf32>
    %13 = arith.negf %12 : vector<2x128xf32>
    %14 = math.exp %13 : vector<2x128xf32>
    %cst_9 = arith.constant 1.000000e+00 : f32
    %15 = vector.broadcast %cst_9 : f32 to vector<2x128xf32>
    %16 = arith.addf %15, %14 : vector<2x128xf32>
    %17 = arith.divf %15, %16 : vector<2x128xf32>
    %c0_10 = arith.constant 0 : index
    %c0_11 = arith.constant 0 : index
    %18 = vector.load %arg5[%c0_10, %c0_11] : memref<128x128xf32, #tpu.memory_space<vmem>>, vector<128x128xf32>
    %cst_12 = arith.constant dense<0.000000e+00> : vector<2x128xf32>
    %19 = tpu.matmul %17, %18, %cst_12 {dimension_numbers = #tpu.dot_dimension_numbers<[1], [0], [0], [1], [0, 0, 1, 1], [], []>} : vector<2x128xf32>, vector<128x128xf32>, vector<2x128xf32> -> vector<2x128xf32>
    %c0_13 = arith.constant 0 : index
    %c0_14 = arith.constant 0 : index
    %20 = vector.load %arg6[%c0_13, %c0_14] : memref<1x128xf32, #tpu.memory_space<vmem>>, vector<1x128xf32>
    %21 = vector.broadcast %20 : vector<1x128xf32> to vector<2x128xf32>
    %22 = arith.addf %19, %21 : vector<2x128xf32>
    %23 = arith.negf %22 : vector<2x128xf32>
    %24 = math.exp %23 : vector<2x128xf32>
    %cst_15 = arith.constant 1.000000e+00 : f32
    %25 = vector.broadcast %cst_15 : f32 to vector<2x128xf32>
    %26 = arith.addf %25, %24 : vector<2x128xf32>
    %27 = arith.divf %25, %26 : vector<2x128xf32>
    %c0_16 = arith.constant 0 : index
    %c0_17 = arith.constant 0 : index
    %28 = vector.load %arg7[%c0_16, %c0_17] : memref<2x128xf32, #tpu.memory_space<vmem>>, vector<2x128xf32>
    tpu.vector_store %arg7[%c0_16, %c0_17], %27 {strides = array<i32>} : memref<2x128xf32, #tpu.memory_space<vmem>>, vector<2x128xf32>,
    return
  }
  func.func @transform_0(%arg0: i32) -> (i32, i32) {
    %c0_i32 = arith.constant 0 : i32
    %c0_i32_0 = arith.constant 0 : i32
    return %arg0, %c0_i32 : i32, i32
  }
  func.func @transform_1(%arg0: i32) -> (i32, i32) {
    %c0_i32 = arith.constant 0 : i32
    %c0_i32_0 = arith.constant 0 : i32
    %c0_i32_1 = arith.constant 0 : i32
    return %c0_i32, %c0_i32_0 : i32, i32
  }
  func.func @transform_2(%arg0: i32) -> (i32, i32) {
    %c0_i32 = arith.constant 0 : i32
    %c0_i32_0 = arith.constant 0 : i32
    %c0_i32_1 = arith.constant 0 : i32
    return %c0_i32, %c0_i32_0 : i32, i32
  }
  func.func @transform_3(%arg0: i32) -> (i32, i32) {
    %c0_i32 = arith.constant 0 : i32
    %c0_i32_0 = arith.constant 0 : i32
    %c0_i32_1 = arith.constant 0 : i32
    return %c0_i32, %c0_i32_0 : i32, i32
  }
  func.func @transform_4(%arg0: i32) -> (i32, i32) {
    %c0_i32 = arith.constant 0 : i32
    %c0_i32_0 = arith.constant 0 : i32
    %c0_i32_1 = arith.constant 0 : i32
    return %c0_i32, %c0_i32_0 : i32, i32
  }
  func.func @transform_5(%arg0: i32) -> (i32, i32) {
    %c0_i32 = arith.constant 0 : i32
    %c0_i32_0 = arith.constant 0 : i32
    %c0_i32_1 = arith.constant 0 : i32
    return %c0_i32, %c0_i32_0 : i32, i32
  }
  func.func @transform_6(%arg0: i32) -> (i32, i32) {
    %c0_i32 = arith.constant 0 : i32
    %c0_i32_0 = arith.constant 0 : i32
    return %arg0, %c0_i32 : i32, i32
  }
}

</mosaic_0001>

<bundles_post_ra>
// kernel: tpu_custom_call.1
= control target key start
LH: loop header
LB: loop body
LE: loop exit
PB: predicated region body
PF: predicated region fallthrough
CT: control target
= control target key end

     0   :  { %11 = vsyncpa [#allocation3], 0  ;;  %s1440_s0 = inlined_call_operand.hbm [shape: f32[2,128], index: 0, kind: input, shape index: {}]   ;;  %s1441_s1 = inlined_call_operand.hbm [shape: f32[128,1024], index: 1, kind: input, shape index: {}]   ;;  %s1442_s2 = inlined_call_operand.hbm [shape: f32[512,128], index: 2, kind: input, shape index: {}]   ;;  %s1443_s3 = inlined_call_operand.vmem [shape: f32[1,128], index: 3, kind: input, shape index: {}]   ;;  %s1444_s4 = inlined_call_operand.hbm [shape: f32[128,128], index: 4, kind: input, shape index: {}]   ;;  %s1445_s5 = inlined_call_operand.vmem [shape: f32[1,128], index: 5, kind: input, shape index: {}]   ;;  %s1446_s6 = inlined_call_operand.hbm [shape: f32[2,128], index: 6, kind: output, shape index: {}]  }
   0x1   :  { %12 = vsyncpa [#allocation6], 0 }
   0x2   :  { %13 = vsyncpa [#allocation9], 0 }
   0x3   :  { %14 = vsyncpa [#allocation4], 0  ;;  %s1316_s21 = smov [#allocation5]   ;;  %s1198_s25 = scalar_lea.hbm %s1441_s1, 16384 }
   0x4   :  { %s30_s22 = sshll.u32 %s1316_s21, 4  ;;  %p1199_p0 = scmp.ne.s32.totalorder %s1441_s1, %s1198_s25  ;;  %s31_s22 = int_to_ptr.vmem [resolvable:$true] %s30_s22 }
   0x5   :  { %p1202_p1 = scmp.lt.u32.totalorder %s1198_s25, %s1441_s1 }
   0x7   :  { %p1204_p2 = pnand %p1202_p1, %p1199_p0 }
   0x9   :  { %1207 = shalt.err (!%p1204_p2)
}
   0xa   :  { %s1208_s30 = scalar_lea.vmem %s31_s22, 16384  ;;  %p1213_p4 = scmp.lt.s32.totalorder %s31_s22, %s31_s22 }
   0xb   :  { %p1209_p3 = scmp.ne.s32.totalorder %s31_s22, %s1208_s30  ;;  %p1214_p5 = scmp.lt.s32.totalorder %s1208_s30, %s1208_s30 }
   0xd   :  { %p1215_p6 = por %p1214_p5, %p1213_p4 }
   0xf   :  { %p1216_p7 = pnand %p1215_p6, %p1209_p3 }
  0x11   :  { %1219 = shalt.err (!%p1216_p7)
}
  0x12   :  { %s1317_s7 = smov 1024   ;;  %s1318_s8 = smov 64  }
  0x13   :  { %36 = dma.hbm_to_vmem [thread:$0]  %s1441_s1, 16384, %s31_s22, [#allocation6], %s1317_s7, %s1317_s7, %s1318_s8  }
  0x14   :  { %s1319_s11 = smov [#allocation2]   ;;  %s1320_s13 = smov [#allocation7]  }
  0x15   :  { %s21_s12 = sshll.u32 %s1319_s11, 4  ;;  %s42_s14 = sshll.u32 %s1320_s13, 4  ;;  %s22_s12 = int_to_ptr.vmem [resolvable:$true] %s21_s12  ;;  %s43_s14 = int_to_ptr.vmem [resolvable:$true] %s42_s14 }
  0x16   :  { %s1220_s17 = scalar_lea.hbm %s1440_s0, 32 }
  0x17   :  { %p1221_p8 = scmp.ne.s32.totalorder %s1440_s0, %s1220_s17  ;;  %p1224_p9 = scmp.lt.u32.totalorder %s1220_s17, %s1440_s0 }
  0x19   :  { %p1226_p10 = pnand %p1224_p9, %p1221_p8 }
  0x1b   :  { %1229 = shalt.err (!%p1226_p10)
}
  0x1c   :  { %s1230_s1 = scalar_lea.vmem %s22_s12, 32  ;;  %p1235_p12 = scmp.lt.s32.totalorder %s22_s12, %s22_s12 }
  0x1d   :  { %p1231_p11 = scmp.ne.s32.totalorder %s22_s12, %s1230_s1  ;;  %p1236_p13 = scmp.lt.s32.totalorder %s1230_s1, %s1230_s1 }
  0x1f   :  { %p1237_p0 = por %p1236_p13, %p1235_p12 }
  0x21   :  { %p1238_p1 = pnand %p1237_p0, %p1231_p11 }
  0x23   :  { %1241 = shalt.err (!%p1238_p1)
}
  0x24   :  { %24 = dma.hbm_to_vmem [thread:$0]  %s1440_s0, 32, %s22_s12, [#allocation3]  }
  0x25   :  { %s1242_s26 = scalar_lea.hbm %s1442_s2, 8192 }
  0x26   :  { %p1243_p2 = scmp.ne.s32.totalorder %s1442_s2, %s1242_s26  ;;  %p1246_p3 = scmp.lt.u32.totalorder %s1242_s26, %s1442_s2 }
  0x28   :  { %p1248_p4 = pnand %p1246_p3, %p1243_p2 }
  0x2a   :  { %1251 = shalt.err (!%p1248_p4)
}
  0x2b   :  { %s1252_s7 = scalar_lea.vmem %s43_s14, 8192  ;;  %p1257_p6 = scmp.lt.s32.totalorder %s43_s14, %s43_s14 }
  0x2c   :  { %p1253_p5 = scmp.ne.s32.totalorder %s43_s14, %s1252_s7  ;;  %p1258_p7 = scmp.lt.s32.totalorder %s1252_s7, %s1252_s7 }
  0x2e   :  { %p1259_p8 = por %p1258_p7, %p1257_p6 }
  0x30   :  { %p1260_p9 = pnand %p1259_p8, %p1253_p5 }
  0x32   :  { %1263 = shalt.err (!%p1260_p9)
}
  0x33   :  { %s1321_s0 = smov 128   ;;  %s1322_s8 = smov 8  }
  0x34   :  { %48 = dma.hbm_to_vmem [thread:$0]  %s1442_s2, 8192, %s43_s14, [#allocation6], %s1321_s0, %s1321_s0, %s1322_s8  }
  0x35   :  { %s1323_s11 = smov [#allocation8]   ;;  %s1264_s16 = scalar_lea.hbm %s1444_s4, 2048 }
  0x36   :  { %s56_s12 = sshll.u32 %s1323_s11, 4  ;;  %p1265_p10 = scmp.ne.s32.totalorder %s1444_s4, %s1264_s16  ;;  %s57_s12 = int_to_ptr.vmem [resolvable:$true] %s56_s12 }
  0x37   :  { %p1268_p11 = scmp.lt.u32.totalorder %s1264_s16, %s1444_s4 }
  0x39   :  { %p1270_p12 = pnand %p1268_p11, %p1265_p10 }
  0x3b   :  { %1273 = shalt.err (!%p1270_p12)
}
  0x3c   :  { %s1274_s21 = scalar_lea.vmem %s57_s12, 2048  ;;  %p1279_p0 = scmp.lt.s32.totalorder %s57_s12, %s57_s12 }
  0x3d   :  { %p1275_p13 = scmp.ne.s32.totalorder %s57_s12, %s1274_s21  ;;  %p1280_p1 = scmp.lt.s32.totalorder %s1274_s21, %s1274_s21 }
  0x3f   :  { %p1281_p2 = por %p1280_p1, %p1279_p0 }
  0x41   :  { %p1282_p3 = pnand %p1281_p2, %p1275_p13 }
  0x43   :  { %1285 = shalt.err (!%p1282_p3)
}
  0x44   :  { %62 = dma.hbm_to_vmem [thread:$0]  %s1444_s4, 2048, %s57_s12, [#allocation9], %s1321_s0, %s1321_s0, %s1322_s8  }
  0x45   :  { %1308 = dma.done.wait [#allocation3], 32  }
  0x46   :  { %1309 = vsyncadd [#allocation3], 4294967264 }
  0x47   :  { %1310 = dma.done.wait [#allocation6], 24576  }
  0x48   :  { %1311 = vsyncadd [#allocation6], 4294942720 }
  0x49   :  { %1312 = dma.done.wait [#allocation9], 2048  }
  0x4a   :  { %1313 = vsyncadd [#allocation9], 4294965248  ;;  %v1324_v0 = vmov 0.0   ;;  %v79_v1 = vld [vmem:[#allocation5 + $0x8] sm:$0xff]  ;;  %v81_v3 = vld [vmem:[#allocation5 + $0x18] sm:$0xff]  ;;  %vm1326_vm0 = vmmov 0  }
  0x4b   :  { %270 = vmatprep.mubr.f32.mxu0 %v1324_v0  ;;  %341 = vmatprep.mubr.f32.mxu1 %v1324_v0  ;;  %v87_v2 = vld [vmem:[#allocation5 + $0x48] sm:$0xff]  ;;  %v89_v5 = vld [vmem:[#allocation5 + $0x58] sm:$0xff]  ;;  %v78_v6 = vld [vmem:[#allocation5] sm:$0xff] }
  0x4c   :  { %v962_v4 = vpack.c.bf16 %v87_v2, %v79_v1  ;;  %v86_v7 = vld [vmem:[#allocation5 + $0x40] sm:$0xff]  ;;  %v994_v8 = vpack.c.bf16 %v89_v5, %v81_v3  ;;  %v80_v10 = vld [vmem:[#allocation5 + $0x10] sm:$0xff]  ;;  %v95_v12 = vld [vmem:[#allocation5 + $0x88] sm:$0xff] }
  0x4d   :  { %v964_v9 = vpack.c.bf16 %v86_v7, %v78_v6  ;;  %v88_v11 = vld [vmem:[#allocation5 + $0x50] sm:$0xff]  ;;  %v103_v14 = vld [vmem:[#allocation5 + $0xc8] sm:$0xff]  ;;  %v97_v15 = vld [vmem:[#allocation5 + $0x98] sm:$0xff] }
  0x4e   :  { %963 = vmatprep.subr.bf16.mxu0 %v962_v4  ;;  %v996_v13 = vpack.c.bf16 %v88_v11, %v80_v10  ;;  %v105_v16 = vld [vmem:[#allocation5 + $0xd8] sm:$0xff]  ;;  %995 = vmatprep.subr.bf16.mxu1 %v994_v8  ;;  %v966_v17 = vpack.c.bf16 %v103_v14, %v95_v12  ;;  %v94_v19 = vld [vmem:[#allocation5 + $0x80] sm:$0xff]  ;;  %v96_v21 = vld [vmem:[#allocation5 + $0x90] sm:$0xff] }
  0x4f   :  { %965 = vmatpush1.bf16.msra.mxu0 %v964_v9  ;;  %v998_v18 = vpack.c.bf16 %v105_v16, %v97_v15  ;;  %v102_v20 = vld [vmem:[#allocation5 + $0xc0] sm:$0xff]  ;;  %v104_v23 = vld [vmem:[#allocation5 + $0xd0] sm:$0xff]  ;;  %v111_v24 = vld [vmem:[#allocation5 + $0x108] sm:$0xff] }
  0x50   :  { %997 = vmatpush1.bf16.msra.mxu1 %v996_v13  ;;  %v968_v22 = vpack.c.bf16 %v102_v20, %v94_v19  ;;  %v119_v25 = vld [vmem:[#allocation5 + $0x148] sm:$0xff]  ;;  %967 = vmatprep.subr.bf16.mxu0 %v966_v17  ;;  %v1000_v26 = vpack.c.bf16 %v104_v23, %v96_v21  ;;  %v113_v28 = vld [vmem:[#allocation5 + $0x118] sm:$0xff]  ;;  %v110_v30 = vld [vmem:[#allocation5 + $0x100] sm:$0xff] }
  0x51   :  { %999 = vmatprep.subr.bf16.mxu1 %v998_v18  ;;  %v970_v27 = vpack.c.bf16 %v119_v25, %v111_v24  ;;  %v121_v29 = vld [vmem:[#allocation5 + $0x158] sm:$0xff]  ;;  %v118_v32 = vld [vmem:[#allocation5 + $0x140] sm:$0xff]  ;;  %v112_v33 = vld [vmem:[#allocation5 + $0x110] sm:$0xff] }
  0x52   :  { %v1002_v31 = vpack.c.bf16 %v121_v29, %v113_v28  ;;  %v120_v34 = vld [vmem:[#allocation5 + $0x150] sm:$0xff]  ;;  %v972_v35 = vpack.c.bf16 %v118_v32, %v110_v30  ;;  %v127_v36 = vld [vmem:[#allocation5 + $0x188] sm:$0xff]  ;;  %v129_v38 = vld [vmem:[#allocation5 + $0x198] sm:$0xff] }
  0x53   :  { %969 = vmatpush1.bf16.msra.mxu0 %v968_v22  ;;  %v135_v37 = vld [vmem:[#allocation5 + $0x1c8] sm:$0xff]  ;;  %v1004_v39 = vpack.c.bf16 %v120_v34, %v112_v33  ;;  %v137_v41 = vld [vmem:[#allocation5 + $0x1d8] sm:$0xff]  ;;  %v126_v42 = vld [vmem:[#allocation5 + $0x180] sm:$0xff] }
  0x54   :  { %1001 = vmatpush1.bf16.msra.mxu1 %v1000_v26  ;;  %971 = vmatprep.subr.bf16.mxu0 %v970_v27  ;;  %v974_v40 = vpack.c.bf16 %v135_v37, %v127_v36  ;;  %v134_v43 = vld [vmem:[#allocation5 + $0x1c0] sm:$0xff]  ;;  %v1006_v44 = vpack.c.bf16 %v137_v41, %v129_v38  ;;  %v128_v45 = vld [vmem:[#allocation5 + $0x190] sm:$0xff]  ;;  %v143_v47 = vld [vmem:[#allocation5 + $0x208] sm:$0xff] }
  0x55   :  { %1003 = vmatprep.subr.bf16.mxu1 %v1002_v31  ;;  %v136_v46 = vld [vmem:[#allocation5 + $0x1d0] sm:$0xff]  ;;  %v151_v48 = vld [vmem:[#allocation5 + $0x248] sm:$0xff]  ;;  %v145_v49 = vld [vmem:[#allocation5 + $0x218] sm:$0xff]  ;;  %v976_v51 = vpack.c.bf16 %v134_v43, %v126_v42 }
  0x56   :  { %v153_v50 = vld [vmem:[#allocation5 + $0x258] sm:$0xff]  ;;  %v1008_v52 = vpack.c.bf16 %v136_v46, %v128_v45  ;;  %v978_v53 = vpack.c.bf16 %v151_v48, %v143_v47  ;;  %v142_v54 = vld [vmem:[#allocation5 + $0x200] sm:$0xff]  ;;  %v144_v56 = vld [vmem:[#allocation5 + $0x210] sm:$0xff] }
  0x57   :  { %973 = vmatpush1.bf16.msra.mxu0 %v972_v35  ;;  %v150_v55 = vld [vmem:[#allocation5 + $0x240] sm:$0xff]  ;;  %v1010_v57 = vpack.c.bf16 %v153_v50, %v145_v49  ;;  %v152_v58 = vld [vmem:[#allocation5 + $0x250] sm:$0xff]  ;;  %v159_v59 = vld [vmem:[#allocation5 + $0x288] sm:$0xff] }
  0x58   :  { %1005 = vmatpush1.bf16.msra.mxu1 %v1004_v39  ;;  %975 = vmatprep.subr.bf16.mxu0 %v974_v40  ;;  %v167_v60 = vld [vmem:[#allocation5 + $0x2c8] sm:$0xff]  ;;  %v161_v61 = vld [vmem:[#allocation5 + $0x298] sm:$0xff]  ;;  %v980_v63 = vpack.c.bf16 %v150_v55, %v142_v54  ;;  %v1012_v1 = vpack.c.bf16 %v152_v58, %v144_v56  ;;  %v158_v3 = vld [vmem:[#allocation5 + $0x280] sm:$0xff] }
  0x59   :  { %1007 = vmatprep.subr.bf16.mxu1 %v1006_v44  ;;  %v169_v62 = vld [vmem:[#allocation5 + $0x2d8] sm:$0xff]  ;;  %v982_v2 = vpack.c.bf16 %v167_v60, %v159_v59  ;;  %v166_v4 = vld [vmem:[#allocation5 + $0x2c0] sm:$0xff]  ;;  %v160_v5 = vld [vmem:[#allocation5 + $0x290] sm:$0xff] }
  0x5a   :  { %v1014_v6 = vpack.c.bf16 %v169_v62, %v161_v61  ;;  %v168_v7 = vld [vmem:[#allocation5 + $0x2d0] sm:$0xff]  ;;  %v175_v8 = vld [vmem:[#allocation5 + $0x308] sm:$0xff]  ;;  %v177_v10 = vld [vmem:[#allocation5 + $0x318] sm:$0xff]  ;;  %v984_v12 = vpack.c.bf16 %v166_v4, %v158_v3 }
  0x5b   :  { %977 = vmatpush1.bf16.msra.mxu0 %v976_v51  ;;  %v183_v9 = vld [vmem:[#allocation5 + $0x348] sm:$0xff]  ;;  %v185_v11 = vld [vmem:[#allocation5 + $0x358] sm:$0xff]  ;;  %v1016_v13 = vpack.c.bf16 %v168_v7, %v160_v5  ;;  %v174_v15 = vld [vmem:[#allocation5 + $0x300] sm:$0xff] }
  0x5c   :  { %1009 = vmatpush1.bf16.msra.mxu1 %v1008_v52  ;;  %979 = vmatprep.subr.bf16.mxu0 %v978_v53  ;;  %v986_v14 = vpack.c.bf16 %v183_v9, %v175_v8  ;;  %v182_v16 = vld [vmem:[#allocation5 + $0x340] sm:$0xff]  ;;  %v176_v17 = vld [vmem:[#allocation5 + $0x310] sm:$0xff]  ;;  %v1018_v18 = vpack.c.bf16 %v185_v11, %v177_v10  ;;  %v191_v20 = vld [vmem:[#allocation5 + $0x388] sm:$0xff] }
  0x5d   :  { %1011 = vmatprep.subr.bf16.mxu1 %v1010_v57  ;;  %v184_v19 = vld [vmem:[#allocation5 + $0x350] sm:$0xff]  ;;  %v199_v21 = vld [vmem:[#allocation5 + $0x3c8] sm:$0xff]  ;;  %v193_v22 = vld [vmem:[#allocation5 + $0x398] sm:$0xff]  ;;  %v988_v24 = vpack.c.bf16 %v182_v16, %v174_v15 }
  0x5e   :  { %v201_v23 = vld [vmem:[#allocation5 + $0x3d8] sm:$0xff]  ;;  %v1020_v25 = vpack.c.bf16 %v184_v19, %v176_v17  ;;  %v990_v26 = vpack.c.bf16 %v199_v21, %v191_v20  ;;  %v190_v27 = vld [vmem:[#allocation5 + $0x380] sm:$0xff]  ;;  %v192_v29 = vld [vmem:[#allocation5 + $0x390] sm:$0xff] }
  0x5f   :  { %981 = vmatpush1.bf16.msra.mxu0 %v980_v63  ;;  %v198_v28 = vld [vmem:[#allocation5 + $0x3c0] sm:$0xff]  ;;  %v1022_v30 = vpack.c.bf16 %v201_v23, %v193_v22  ;;  %v200_v31 = vld [vmem:[#allocation5 + $0x3d0] sm:$0xff]  ;;  %v83_v32 = vld [vmem:[#allocation5 + $0x28] sm:$0xff] }
  0x60   :  { %1013 = vmatpush1.bf16.msra.mxu1 %v1012_v1  ;;  %983 = vmatprep.subr.bf16.mxu0 %v982_v2  ;;  %v91_v33 = vld [vmem:[#allocation5 + $0x68] sm:$0xff]  ;;  %v85_v34 = vld [vmem:[#allocation5 + $0x38] sm:$0xff]  ;;  %v992_v36 = vpack.c.bf16 %v198_v28, %v190_v27  ;;  %v1024_v37 = vpack.c.bf16 %v200_v31, %v192_v29  ;;  %v82_v39 = vld [vmem:[#allocation5 + $0x20] sm:$0xff] }
  0x61   :  { %1015 = vmatprep.subr.bf16.mxu1 %v1014_v6  ;;  %v93_v35 = vld [vmem:[#allocation5 + $0x78] sm:$0xff]  ;;  %v1026_v38 = vpack.c.bf16 %v91_v33, %v83_v32  ;;  %v90_v40 = vld [vmem:[#allocation5 + $0x60] sm:$0xff]  ;;  %v84_v41 = vld [vmem:[#allocation5 + $0x30] sm:$0xff] }
  0x62   :  { %v1058_v42 = vpack.c.bf16 %v93_v35, %v85_v34  ;;  %v92_v43 = vld [vmem:[#allocation5 + $0x70] sm:$0xff]  ;;  %v99_v44 = vld [vmem:[#allocation5 + $0xa8] sm:$0xff]  ;;  %v101_v46 = vld [vmem:[#allocation5 + $0xb8] sm:$0xff]  ;;  %v1028_v49 = vpack.c.bf16 %v90_v40, %v82_v39 }
  0x63   :  { %985 = vmatpush1.bf16.msra.mxu0 %v984_v12  ;;  %v107_v45 = vld [vmem:[#allocation5 + $0xe8] sm:$0xff]  ;;  %v109_v47 = vld [vmem:[#allocation5 + $0xf8] sm:$0xff]  ;;  %v1060_v50 = vpack.c.bf16 %v92_v43, %v84_v41  ;;  %v98_v52 = vld [vmem:[#allocation5 + $0xa0] sm:$0xff] }
  0x64   :  { %1017 = vmatpush1.bf16.msra.mxu1 %v1016_v13  ;;  %987 = vmatprep.subr.bf16.mxu0 %v986_v14  ;;  %v1413_v48 = vld [vmem:[#allocation2] sm:$0x3]  ;;  %v1030_v51 = vpack.c.bf16 %v107_v45, %v99_v44  ;;  %v106_v53 = vld [vmem:[#allocation5 + $0xe0] sm:$0xff]  ;;  %v100_v54 = vld [vmem:[#allocation5 + $0xb0] sm:$0xff]  ;;  %v1062_v55 = vpack.c.bf16 %v109_v47, %v101_v46 }
  0x65   :  { %1019 = vmatprep.subr.bf16.mxu1 %v1018_v18  ;;  %v108_v56 = vld [vmem:[#allocation5 + $0xf0] sm:$0xff]  ;;  %v115_v57 = vld [vmem:[#allocation5 + $0x128] sm:$0xff]  ;;  %v117_v59 = vld [vmem:[#allocation5 + $0x138] sm:$0xff]  ;;  %v1032_v61 = vpack.c.bf16 %v106_v53, %v98_v52 }
  0x66   :  { %v123_v58 = vld [vmem:[#allocation5 + $0x168] sm:$0xff]  ;;  %v125_v60 = vld [vmem:[#allocation5 + $0x178] sm:$0xff]  ;;  %v1064_v62 = vpack.c.bf16 %v108_v56, %v100_v54  ;;  %v114_v1 = vld [vmem:[#allocation5 + $0x120] sm:$0xff] }
  0x67   :  { %989 = vmatpush1.bf16.msra.mxu0 %v988_v24  ;;  %v1034_v63 = vpack.c.bf16 %v123_v58, %v115_v57  ;;  %v122_v2 = vld [vmem:[#allocation5 + $0x160] sm:$0xff]  ;;  %v116_v3 = vld [vmem:[#allocation5 + $0x130] sm:$0xff]  ;;  %v1066_v4 = vpack.c.bf16 %v125_v60, %v117_v59  ;;  %v131_v6 = vld [vmem:[#allocation5 + $0x1a8] sm:$0xff] }
  0x68   :  { %1021 = vmatpush1.bf16.msra.mxu1 %v1020_v25  ;;  %991 = vmatprep.subr.bf16.mxu0 %v990_v26  ;;  %v124_v5 = vld [vmem:[#allocation5 + $0x170] sm:$0xff]  ;;  %v139_v7 = vld [vmem:[#allocation5 + $0x1e8] sm:$0xff]  ;;  %v133_v8 = vld [vmem:[#allocation5 + $0x1b8] sm:$0xff]  ;;  %v1036_v10 = vpack.c.bf16 %v122_v2, %v114_v1 }
  0x69   :  { %1023 = vmatprep.subr.bf16.mxu1 %v1022_v30  ;;  %v141_v9 = vld [vmem:[#allocation5 + $0x1f8] sm:$0xff]  ;;  %v1068_v11 = vpack.c.bf16 %v124_v5, %v116_v3  ;;  %v1038_v12 = vpack.c.bf16 %v139_v7, %v131_v6  ;;  %v130_v13 = vld [vmem:[#allocation5 + $0x1a0] sm:$0xff]  ;;  %v132_v15 = vld [vmem:[#allocation5 + $0x1b0] sm:$0xff] }
  0x6a   :  { %v138_v14 = vld [vmem:[#allocation5 + $0x1e0] sm:$0xff]  ;;  %v1070_v16 = vpack.c.bf16 %v141_v9, %v133_v8  ;;  %v140_v17 = vld [vmem:[#allocation5 + $0x1f0] sm:$0xff]  ;;  %v147_v18 = vld [vmem:[#allocation5 + $0x228] sm:$0xff] }
  0x6b   :  { %993 = vmatpush1.bf16.msra.mxu0 %v992_v36  ;;  %v155_v19 = vld [vmem:[#allocation5 + $0x268] sm:$0xff]  ;;  %v149_v20 = vld [vmem:[#allocation5 + $0x238] sm:$0xff]  ;;  %v1040_v22 = vpack.c.bf16 %v138_v14, %v130_v13  ;;  %v1072_v23 = vpack.c.bf16 %v140_v17, %v132_v15  ;;  %v146_v25 = vld [vmem:[#allocation5 + $0x220] sm:$0xff] }
  0x6c   :  { %1025 = vmatpush1.bf16.msra.mxu1 %v1024_v37  ;;  %1027 = vmatprep.subr.bf16.mxu0 %v1026_v38  ;;  %v157_v21 = vld [vmem:[#allocation5 + $0x278] sm:$0xff]  ;;  %v1042_v24 = vpack.c.bf16 %v155_v19, %v147_v18  ;;  %v154_v26 = vld [vmem:[#allocation5 + $0x260] sm:$0xff]  ;;  %v148_v27 = vld [vmem:[#allocation5 + $0x230] sm:$0xff] }
  0x6d   :  { %1059 = vmatprep.subr.bf16.mxu1 %v1058_v42  ;;  %v1074_v28 = vpack.c.bf16 %v157_v21, %v149_v20  ;;  %v156_v29 = vld [vmem:[#allocation5 + $0x270] sm:$0xff]  ;;  %v163_v30 = vld [vmem:[#allocation5 + $0x2a8] sm:$0xff]  ;;  %v165_v32 = vld [vmem:[#allocation5 + $0x2b8] sm:$0xff]  ;;  %v1044_v34 = vpack.c.bf16 %v154_v26, %v146_v25 }
  0x6e   :  { %271 = vmatmul.mubr.f32.vlgmr.msra.gmra.mrb[0].mxu0 %v1413_v48  ;;  %v171_v31 = vld [vmem:[#allocation5 + $0x2e8] sm:$0xff]  ;;  %v173_v33 = vld [vmem:[#allocation5 + $0x2f8] sm:$0xff]  ;;  %v1076_v35 = vpack.c.bf16 %v156_v29, %v148_v27  ;;  %v162_v37 = vld [vmem:[#allocation5 + $0x2a0] sm:$0xff] }
  0x6f   :  { %342 = vmatmul.mubr.f32.vlgmr.msra.gmra.mrb[0].mxu1 %v1413_v48  ;;  %1029 = vmatpush1.bf16.msra.mxu0 %v1028_v49  ;;  %v1046_v36 = vpack.c.bf16 %v171_v31, %v163_v30  ;;  %v170_v38 = vld [vmem:[#allocation5 + $0x2e0] sm:$0xff]  ;;  %v164_v39 = vld [vmem:[#allocation5 + $0x2b0] sm:$0xff]  ;;  %v1078_v40 = vpack.c.bf16 %v173_v33, %v165_v32  ;;  %v179_v42 = vld [vmem:[#allocation5 + $0x328] sm:$0xff] }
  0x70   :  { %1061 = vmatpush1.bf16.msra.mxu1 %v1060_v50  ;;  %1031 = vmatprep.subr.bf16.mxu0 %v1030_v51  ;;  %v172_v41 = vld [vmem:[#allocation5 + $0x2f0] sm:$0xff]  ;;  %v187_v43 = vld [vmem:[#allocation5 + $0x368] sm:$0xff]  ;;  %v181_v44 = vld [vmem:[#allocation5 + $0x338] sm:$0xff]  ;;  %v1048_v46 = vpack.c.bf16 %v170_v38, %v162_v37 }
  0x71   :  { %1063 = vmatprep.subr.bf16.mxu1 %v1062_v55  ;;  %412 = vmatprep.mubr.f32.mxu0 %v1324_v0  ;;  %v189_v45 = vld [vmem:[#allocation5 + $0x378] sm:$0xff]  ;;  %v1080_v47 = vpack.c.bf16 %v172_v41, %v164_v39  ;;  %v1050_v49 = vpack.c.bf16 %v187_v43, %v179_v42  ;;  %v178_v50 = vld [vmem:[#allocation5 + $0x320] sm:$0xff]  ;;  %v180_v52 = vld [vmem:[#allocation5 + $0x330] sm:$0xff] }
  0x72   :  { %483 = vmatprep.mubr.f32.mxu1 %v1324_v0  ;;  %v186_v51 = vld [vmem:[#allocation5 + $0x360] sm:$0xff]  ;;  %v1082_v53 = vpack.c.bf16 %v189_v45, %v181_v44  ;;  %v188_v54 = vld [vmem:[#allocation5 + $0x370] sm:$0xff]  ;;  %v195_v55 = vld [vmem:[#allocation5 + $0x3a8] sm:$0xff] }
  0x73   :  { %1033 = vmatpush1.bf16.msra.mxu0 %v1032_v61  ;;  %v203_v56 = vld [vmem:[#allocation5 + $0x3e8] sm:$0xff]  ;;  %v197_v57 = vld [vmem:[#allocation5 + $0x3b8] sm:$0xff]  ;;  %v1052_v59 = vpack.c.bf16 %v186_v51, %v178_v50  ;;  %v1084_v60 = vpack.c.bf16 %v188_v54, %v180_v52  ;;  %v196_v2 = vld [vmem:[#allocation5 + $0x3b0] sm:$0xff] }
  0x74   :  { %1065 = vmatpush1.bf16.msra.mxu1 %v1064_v62  ;;  %1035 = vmatprep.subr.bf16.mxu0 %v1034_v63  ;;  %v205_v58 = vld [vmem:[#allocation5 + $0x3f8] sm:$0xff]  ;;  %v1054_v61 = vpack.c.bf16 %v203_v56, %v195_v55  ;;  %v194_v62 = vld [vmem:[#allocation5 + $0x3a0] sm:$0xff]  ;;  %v204_v3 = vld [vmem:[#allocation5 + $0x3f0] sm:$0xff] }
  0x75   :  { %1067 = vmatprep.subr.bf16.mxu1 %v1066_v4  ;;  %v202_v63 = vld [vmem:[#allocation5 + $0x3e0] sm:$0xff]  ;;  %v1086_v1 = vpack.c.bf16 %v205_v58, %v197_v57  ;;  %v1088_v5 = vpack.c.bf16 %v204_v3, %v196_v2  ;;  %v519_v7 = vld [vmem:[#allocation7 + $0x88] sm:$0xff]  ;;  %v520_v17 = vld [vmem:[#allocation7 + $0x90] sm:$0xff] }
  0x76   :  { %v1056_v4 = vpack.c.bf16 %v202_v63, %v194_v62  ;;  %v518_v6 = vld [vmem:[#allocation7 + $0x80] sm:$0xff]  ;;  %v521_v19 = vld [vmem:[#allocation7 + $0x98] sm:$0xff]  ;;  %v552_v20 = vld [vmem:[#allocation7 + $0x190] sm:$0xff] }
  0x77   :  { %1037 = vmatpush1.bf16.msra.mxu0 %v1036_v10  ;;  %v550_v8 = vld [vmem:[#allocation7 + $0x180] sm:$0xff]  ;;  %v1090_v9 = vpack.c.bf16 %v519_v7, %v518_v6  ;;  %v551_v10 = vld [vmem:[#allocation7 + $0x188] sm:$0xff]  ;;  %v553_v21 = vld [vmem:[#allocation7 + $0x198] sm:$0xff] }
  0x78   :  { %1069 = vmatpush1.bf16.msra.mxu1 %v1068_v11  ;;  %1039 = vmatprep.subr.bf16.mxu0 %v1038_v12  ;;  %v502_v11 = vld [vmem:[#allocation7] sm:$0xff]  ;;  %v503_v12 = vld [vmem:[#allocation7 + $0x8] sm:$0xff]  ;;  %v1122_v13 = vpack.c.bf16 %v551_v10, %v550_v8  ;;  %v536_v25 = vld [vmem:[#allocation7 + $0x110] sm:$0xff] }
  0x79   :  { %1071 = vmatprep.subr.bf16.mxu1 %v1070_v16  ;;  %v1092_v14 = vpack.c.bf16 %v503_v12, %v502_v11  ;;  %v534_v15 = vld [vmem:[#allocation7 + $0x100] sm:$0xff]  ;;  %v535_v16 = vld [vmem:[#allocation7 + $0x108] sm:$0xff]  ;;  %v537_v27 = vld [vmem:[#allocation7 + $0x118] sm:$0xff] }
  0x7a   :  { %v1124_v18 = vpack.c.bf16 %v535_v16, %v534_v15  ;;  %v523_v29 = vld [vmem:[#allocation7 + $0xa8] sm:$0xff]  ;;  %v1128_v30 = vpack.c.bf16 %v537_v27, %v536_v25  ;;  %v554_v32 = vld [vmem:[#allocation7 + $0x1a0] sm:$0xff]  ;;  %v525_v41 = vld [vmem:[#allocation7 + $0xb8] sm:$0xff] }
  0x7b   :  { %1041 = vmatpush1.bf16.msra.mxu0 %v1040_v22  ;;  %v1126_v22 = vpack.c.bf16 %v553_v21, %v552_v20  ;;  %v555_v33 = vld [vmem:[#allocation7 + $0x1a8] sm:$0xff]  ;;  %v538_v37 = vld [vmem:[#allocation7 + $0x120] sm:$0xff]  ;;  %v556_v42 = vld [vmem:[#allocation7 + $0x1b0] sm:$0xff] }
  0x7c   :  { %1073 = vmatpush1.bf16.msra.mxu1 %v1072_v23  ;;  %1043 = vmatprep.subr.bf16.mxu0 %v1042_v24  ;;  %v504_v23 = vld [vmem:[#allocation7 + $0x10] sm:$0xff]  ;;  %v505_v24 = vld [vmem:[#allocation7 + $0x18] sm:$0xff]  ;;  %v539_v38 = vld [vmem:[#allocation7 + $0x128] sm:$0xff] }
  0x7d   :  { %1075 = vmatprep.subr.bf16.mxu1 %v1074_v28  ;;  %v1096_v26 = vpack.c.bf16 %v505_v24, %v504_v23  ;;  %v522_v28 = vld [vmem:[#allocation7 + $0xa0] sm:$0xff]  ;;  %v1132_v43 = vpack.c.bf16 %v539_v38, %v538_v37  ;;  %v557_v45 = vld [vmem:[#allocation7 + $0x1b8] sm:$0xff]  ;;  %v540_v50 = vld [vmem:[#allocation7 + $0x130] sm:$0xff] }
  0x7e   :  { %v1098_v31 = vpack.c.bf16 %v523_v29, %v522_v28  ;;  %v541_v51 = vld [vmem:[#allocation7 + $0x138] sm:$0xff]  ;;  %v526_v52 = vld [vmem:[#allocation7 + $0xc0] sm:$0xff]  ;;  %v559_v55 = vld [vmem:[#allocation7 + $0x1c8] sm:$0xff] }
  0x7f   :  { %1045 = vmatpush1.bf16.msra.mxu0 %v1044_v34  ;;  %v506_v34 = vld [vmem:[#allocation7 + $0x20] sm:$0xff]  ;;  %v1136_v57 = vpack.c.bf16 %v541_v51, %v540_v50  ;;  %v543_v63 = vld [vmem:[#allocation7 + $0x148] sm:$0xff]  ;;  %v529_v2 = vld [vmem:[#allocation7 + $0xd8] sm:$0xff] }
  0x80   :  { %1077 = vmatpush1.bf16.msra.mxu1 %v1076_v35  ;;  %1047 = vmatprep.subr.bf16.mxu0 %v1046_v36  ;;  %v1130_v35 = vpack.c.bf16 %v555_v33, %v554_v32  ;;  %v507_v36 = vld [vmem:[#allocation7 + $0x28] sm:$0xff]  ;;  %v558_v54 = vld [vmem:[#allocation7 + $0x1c0] sm:$0xff]  ;;  %v560_v3 = vld [vmem:[#allocation7 + $0x1d0] sm:$0xff] }
  0x81   :  { %1079 = vmatprep.subr.bf16.mxu1 %v1078_v40  ;;  %v1100_v39 = vpack.c.bf16 %v507_v36, %v506_v34  ;;  %v524_v40 = vld [vmem:[#allocation7 + $0xb0] sm:$0xff]  ;;  %v1138_v62 = vpack.c.bf16 %v559_v55, %v558_v54  ;;  %v545_v12 = vld [vmem:[#allocation7 + $0x158] sm:$0xff]  ;;  %v562_v15 = vld [vmem:[#allocation7 + $0x1e0] sm:$0xff] }
  0x82   :  { %v1102_v44 = vpack.c.bf16 %v525_v41, %v524_v40  ;;  %v512_v8 = vld [vmem:[#allocation7 + $0x50] sm:$0xff]  ;;  %v563_v16 = vld [vmem:[#allocation7 + $0x1e8] sm:$0xff]  ;;  %v514_v21 = vld [vmem:[#allocation7 + $0x60] sm:$0xff] }
  0x83   :  { %1049 = vmatpush1.bf16.msra.mxu0 %v1048_v46  ;;  %v508_v46 = vld [vmem:[#allocation7 + $0x30] sm:$0xff]  ;;  %v1146_v20 = vpack.c.bf16 %v563_v16, %v562_v15  ;;  %v547_v24 = vld [vmem:[#allocation7 + $0x168] sm:$0xff]  ;;  %v533_v27 = vld [vmem:[#allocation7 + $0xf8] sm:$0xff] }
  0x84   :  { %1081 = vmatpush1.bf16.msra.mxu1 %v1080_v47  ;;  %1051 = vmatprep.subr.bf16.mxu0 %v1050_v49  ;;  %v509_v47 = vld [vmem:[#allocation7 + $0x38] sm:$0xff]  ;;  %v1134_v49 = vpack.c.bf16 %v557_v45, %v556_v42  ;;  %v544_v10 = vld [vmem:[#allocation7 + $0x150] sm:$0xff]  ;;  %v731_v15 = vld [vmem:[#allocation8 + $0x60] sm:$0xff] }
  0x85   :  { %1083 = vmatprep.subr.bf16.mxu1 %v1082_v53  ;;  %v527_v53 = vld [vmem:[#allocation7 + $0xc8] sm:$0xff]  ;;  %v1104_v56 = vpack.c.bf16 %v509_v47, %v508_v46  ;;  %v564_v28 = vld [vmem:[#allocation7 + $0x1f0] sm:$0xff]  ;;  %v517_v32 = vld [vmem:[#allocation7 + $0x78] sm:$0xff] }
  0x86   :  { %v1106_v58 = vpack.c.bf16 %v527_v53, %v526_v52  ;;  %v549_v36 = vld [vmem:[#allocation7 + $0x178] sm:$0xff]  ;;  %v732_v16 = vld [vmem:[#allocation8 + $0x68] sm:$0xff] }
  0x87   :  { %1053 = vmatpush1.bf16.msra.mxu0 %v1052_v59  ;;  %v510_v59 = vld [vmem:[#allocation7 + $0x40] sm:$0xff] }
  0x88   :  { %1085 = vmatpush1.bf16.msra.mxu1 %v1084_v60  ;;  %1055 = vmatprep.subr.bf16.mxu0 %v1054_v61  ;;  %v511_v60 = vld [vmem:[#allocation7 + $0x48] sm:$0xff]  ;;  %v542_v61 = vld [vmem:[#allocation7 + $0x140] sm:$0xff] }
  0x89   :  { %1087 = vmatprep.subr.bf16.mxu1 %v1086_v1  ;;  %v528_v1 = vld [vmem:[#allocation7 + $0xd0] sm:$0xff]  ;;  %v1140_v6 = vpack.c.bf16 %v543_v63, %v542_v61 }
  0x8a   :  { %v1110_v7 = vpack.c.bf16 %v529_v2, %v528_v1  ;;  %v721_v63 = vld [vmem:[#allocation8 + $0x10] sm:$0xff]  ;;  %v722_v1 = vld [vmem:[#allocation8 + $0x18] sm:$0xff] }
  0x8b   :  { %1057 = vmatpush1.bf16.msra.mxu0 %v1056_v4  ;;  %v561_v4 = vld [vmem:[#allocation7 + $0x1d8] sm:$0xff]  ;;  %v1158_v2 = vpack.c.bf16 %v722_v1, %v721_v63 }
  0x8c   :  { %1089 = vmatpush1.bf16.msra.mxu1 %v1088_v5  ;;  %1091 = vmatprep.subr.bf16.mxu0 %v1090_v9  ;;  %v1108_v5 = vpack.c.bf16 %v511_v60, %v510_v59  ;;  %v513_v9 = vld [vmem:[#allocation7 + $0x58] sm:$0xff]  ;;  %v1142_v11 = vpack.c.bf16 %v561_v4, %v560_v3  ;;  %v719_v59 = vld [vmem:[#allocation8] sm:$0xff]  ;;  %v720_v60 = vld [vmem:[#allocation8 + $0x8] sm:$0xff] }
  0x8d   :  { %1123 = vmatprep.subr.bf16.mxu1 %v1122_v13  ;;  %v530_v13 = vld [vmem:[#allocation7 + $0xe0] sm:$0xff]  ;;  %v1155_v61 = vpack.c.bf16 %v720_v60, %v719_v59  ;;  %v724_v4 = vld [vmem:[#allocation8 + $0x28] sm:$0xff] }
  0x8e   :  { %413 = vmatmul.mubr.f32.vlgmr.msra.gmra.mrb[2].mxu0 %v1413_v48  ;;  %v723_v3 = vld [vmem:[#allocation8 + $0x20] sm:$0xff] }
  0x8f   :  { %484 = vmatmul.mubr.f32.vlgmr.msra.gmra.mrb[2].mxu1 %v1413_v48  ;;  %1093 = vmatpush3.bf16.msra.mxu0 %v1092_v14  ;;  %v1094_v48 = vpack.c.bf16 %v521_v19, %v520_v17  ;;  %v531_v14 = vld [vmem:[#allocation7 + $0xe8] sm:$0xff]  ;;  %v1112_v17 = vpack.c.bf16 %v513_v9, %v512_v8  ;;  %v727_v9 = vld [vmem:[#allocation8 + $0x40] sm:$0xff] }
  0x90   :  { %1125 = vmatpush3.bf16.msra.mxu1 %v1124_v18  ;;  %v1144_v18 = vpack.c.bf16 %v545_v12, %v544_v10  ;;  %v1114_v19 = vpack.c.bf16 %v531_v14, %v530_v13  ;;  %v728_v10 = vld [vmem:[#allocation8 + $0x48] sm:$0xff]  ;;  %v729_v12 = vld [vmem:[#allocation8 + $0x50] sm:$0xff]  ;;  %v730_v13 = vld [vmem:[#allocation8 + $0x58] sm:$0xff] }
  0x91   :  { %1095 = vmatprep.subr.bf16.mxu0 %v1094_v48  ;;  %1127 = vmatprep.subr.bf16.mxu1 %v1126_v22  ;;  %v515_v48 = vld [vmem:[#allocation7 + $0x68] sm:$0xff]  ;;  %v546_v22 = vld [vmem:[#allocation7 + $0x160] sm:$0xff]  ;;  %v1170_v14 = vpack.c.bf16 %v730_v13, %v729_v12 }
  0x92   :  { %v1116_v23 = vpack.c.bf16 %v515_v48, %v514_v21  ;;  %v1148_v25 = vpack.c.bf16 %v547_v24, %v546_v22  ;;  %v836_v22 = vld [vmem:[%s1443_s3] ss:$0 sm:$0xff]  ;;  %s1327_s3 = smov [#allocation10]  }
  0x93   :  { %1097 = vmatpush3.bf16.msra.mxu0 %v1096_v26  ;;  %v532_v26 = vld [vmem:[#allocation7 + $0xf0] sm:$0xff]  ;;  %s825_s24 = sshll.u32 %s1327_s3, 4  ;;  %s826_s24 = int_to_ptr.vmem [resolvable:$true] %s825_s24 }
  0x94   :  { %1129 = vmatpush3.bf16.msra.mxu1 %v1128_v30  ;;  %1099 = vmatprep.subr.bf16.mxu0 %v1098_v31  ;;  %v1118_v29 = vpack.c.bf16 %v533_v27, %v532_v26  ;;  %v565_v30 = vld [vmem:[#allocation7 + $0x1f8] sm:$0xff]  ;;  %v516_v31 = vld [vmem:[#allocation7 + $0x70] sm:$0xff]  ;;  %s1286_s25 = scalar_lea.vmem %s826_s24, 32  ;;  %p1291_p5 = scmp.lt.s32.totalorder %s826_s24, %s826_s24 }
  0x95   :  { %1131 = vmatprep.subr.bf16.mxu1 %v1130_v35  ;;  %v1150_v33 = vpack.c.bf16 %v565_v30, %v564_v28  ;;  %v1120_v34 = vpack.c.bf16 %v517_v32, %v516_v31  ;;  %v548_v35 = vld [vmem:[#allocation7 + $0x170] sm:$0xff]  ;;  %v838_v32 = vld [vmem:[%s1445_s5] ss:$0 sm:$0xff]  ;;  %p1287_p4 = scmp.ne.s32.totalorder %s826_s24, %s1286_s25  ;;  %p1292_p6 = scmp.lt.s32.totalorder %s1286_s25, %s1286_s25 }
  0x96   :  { %v1152_v37 = vpack.c.bf16 %v549_v36, %v548_v35 }
  0x97   :  { %1101 = vmatpush3.bf16.msra.mxu0 %v1100_v39  ;;  %p1293_p7 = por %p1292_p6, %p1291_p5 }
  0x98   :  { %1133 = vmatpush3.bf16.msra.mxu1 %v1132_v43  ;;  %1103 = vmatprep.subr.bf16.mxu0 %v1102_v44 }
  0x99   :  { %1135 = vmatprep.subr.bf16.mxu1 %v1134_v49  ;;  %p1294_p8 = pnand %p1293_p7, %p1287_p4 }
  0x9b   :  { %1105 = vmatpush3.bf16.msra.mxu0 %v1104_v56 }
  0x9c   :  { %1137 = vmatpush3.bf16.msra.mxu1 %v1136_v57  ;;  %1107 = vmatprep.subr.bf16.mxu0 %v1106_v58 }
  0x9d   :  { %1139 = vmatprep.subr.bf16.mxu1 %v1138_v62  ;;  %v1325_v62 = vmov 0.0|0.0  }
  0x9f   :  { %1109 = vmatpush3.bf16.msra.mxu0 %v1108_v5  ;;  %v1161_v5 = vpack.c.bf16 %v724_v4, %v723_v3 }
  0xa0   :  { %1141 = vmatpush3.bf16.msra.mxu1 %v1140_v6  ;;  %1111 = vmatprep.subr.bf16.mxu0 %v1110_v7  ;;  %v725_v6 = vld [vmem:[#allocation8 + $0x30] sm:$0xff]  ;;  %v726_v7 = vld [vmem:[#allocation8 + $0x38] sm:$0xff] }
  0xa1   :  { %1143 = vmatprep.subr.bf16.mxu1 %v1142_v11  ;;  %v1164_v8 = vpack.c.bf16 %v726_v7, %v725_v6  ;;  %v1167_v11 = vpack.c.bf16 %v728_v10, %v727_v9 }
  0xa3   :  { %1113 = vmatpush3.bf16.msra.mxu0 %v1112_v17  ;;  %v1173_v17 = vpack.c.bf16 %v732_v16, %v731_v15 }
  0xa4   :  { %1145 = vmatpush3.bf16.msra.mxu1 %v1144_v18  ;;  %1115 = vmatprep.subr.bf16.mxu0 %v1114_v19  ;;  %v733_v18 = vld [vmem:[#allocation8 + $0x70] sm:$0xff]  ;;  %v734_v19 = vld [vmem:[#allocation8 + $0x78] sm:$0xff] }
  0xa5   :  { %1147 = vmatprep.subr.bf16.mxu1 %v1146_v20  ;;  %v1176_v20 = vpack.c.bf16 %v734_v19, %v733_v18 }
  0xa7   :  { %1117 = vmatpush3.bf16.msra.mxu0 %v1116_v23 }
  0xa8   :  { %1149 = vmatpush3.bf16.msra.mxu1 %v1148_v25  ;;  %1119 = vmatprep.subr.bf16.mxu0 %v1118_v29 }
  0xa9   :  { %1151 = vmatprep.subr.bf16.mxu1 %v1150_v33 }
  0xab   :  { %1121 = vmatpush3.bf16.msra.mxu0 %v1120_v34 }
  0xac   :  { %1153 = vmatpush3.bf16.msra.mxu1 %v1152_v37  ;;  %1154 = vmatprep.subr.bf16.mxu0 %v1325_v62 }
 0x141   :  { %v272_v38 = vpop.f32.mrb[0].mxu0 }
 0x142   :  { %v274_v39 = vpop.f32.mrb[1].mxu0  ;;  %v343_v40 = vpop.f32.mrb[0].mxu1  ;;  %v490_v43 = vmax.f32 %v272_v38, 0.0 }
 0x143   :  { %v345_v41 = vpop.f32.mrb[1].mxu1  ;;  %v491_v47 = vmax.f32 %v274_v39, 0.0  ;;  %v492_v49 = vmax.f32 %v343_v40, 0.0 }
 0x144   :  { %v493_v53 = vmax.f32 %v345_v41, 0.0 }
 0x161   :  { %v414_v42 = vpop.f32.mrb[2].mxu0 }
 0x162   :  { %v494_v44 = vmax.f32 %v414_v42, 0.0  ;;  %v485_v45 = vpop.f32.mrb[2].mxu1  ;;  %v416_v46 = vpop.f32.mrb[3].mxu0 }
 0x163   :  { %v496_v50 = vmax.f32 %v485_v45, 0.0  ;;  %v495_v51 = vmax.f32 %v416_v46, 0.0  ;;  %v487_v52 = vpop.f32.mrb[3].mxu1 }
 0x164   :  { %v498_v54 = vmax.f32 %v490_v43, %v494_v44  ;;  %v497_v55 = vmax.f32 %v487_v52, 0.0 }
 0x165   :  { %v500_v56 = vmax.f32 %v492_v49, %v496_v50  ;;  %v499_v57 = vmax.f32 %v491_v47, %v495_v51 }
 0x166   :  { %v501_v58 = vmax.f32 %v493_v53, %v497_v55 }
 0x167   :  { %637 = vmatprep.mubr.f32.mxu0 %v499_v57 }
 0x168   :  { %707 = vmatprep.mubr.f32.mxu1 %v501_v58  ;;  %638 = vmatmul.mubr.f32.vlgmr.msra.gmra.mrb[4].mxu0 %v498_v54 }
 0x169   :  { %708 = vmatmul.mubr.f32.vlgmr.msra.gmra.mrb[4].mxu1 %v500_v56  ;;  %1156 = vmatpush3.bf16.msra.mxu0 %v1155_v61 }
 0x16a   :  { %1157 = vmatprep.subr.bf16.mxu0 %v1325_v62  ;;  %959 = vmatprep.mubr.msk.f32.mxu0 %vm1326_vm0, %v1324_v0 }
 0x16d   :  { %1159 = vmatpush3.bf16.msra.mxu0 %v1158_v2 }
 0x16e   :  { %1160 = vmatprep.subr.bf16.mxu0 %v1325_v62 }
 0x171   :  { %1162 = vmatpush3.bf16.msra.mxu0 %v1161_v5 }
 0x172   :  { %1163 = vmatprep.subr.bf16.mxu0 %v1325_v62 }
 0x175   :  { %1165 = vmatpush3.bf16.msra.mxu0 %v1164_v8 }
 0x176   :  { %1166 = vmatprep.subr.bf16.mxu0 %v1325_v62 }
 0x179   :  { %1168 = vmatpush3.bf16.msra.mxu0 %v1167_v11 }
 0x17a   :  { %1169 = vmatprep.subr.bf16.mxu0 %v1325_v62 }
 0x17d   :  { %1171 = vmatpush3.bf16.msra.mxu0 %v1170_v14 }
 0x17e   :  { %1172 = vmatprep.subr.bf16.mxu0 %v1325_v62 }
 0x181   :  { %1174 = vmatpush3.bf16.msra.mxu0 %v1173_v17 }
 0x182   :  { %1175 = vmatprep.subr.bf16.mxu0 %v1325_v62 }
 0x185   :  { %1177 = vmatpush3.bf16.msra.mxu0 %v1176_v20 }
 0x23b   :  { %v872_v21 = vpop.f32.mrb[4].mxu0 }
 0x23c   :  { %v907_v48 = vpop.f32.mrb[4].mxu1  ;;  %v873_v23 = vpop.f32.mrb[5].mxu0 }
 0x23d   :  { %v874_v24 = vadd.f32 %v873_v23, %v872_v21  ;;  %v908_v25 = vpop.f32.mrb[5].mxu1 }
 0x23e   :  { %v909_v26 = vadd.f32 %v908_v25, %v907_v48 }
 0x23f   :  { %v640_v27 = vadd.f32 %v874_v24, %v836_v22 }
 0x241   :  { %v710_v28 = vadd.f32 %v909_v26, %v640_v27 }
 0x243   :  { %v837_v0 = vmul.f32 -1.442695, %v710_v28 }
 0x245   :  { %1190 = vpow2.f32 %v837_v0 }
 0x24f   :  { %v1191_v29 = vpop.eup %1190 }
 0x250   :  { %v716_v30 = vadd.f32 1.0, %v1191_v29 }
 0x252   :  { %1192 = vrcp.f32 %v716_v30 }
 0x25c   :  { %v1193_v31 = vpop.eup %1192 }
 0x25d   :  { %960 = vmatmul.mubr.f32.vlgmr.msra.gmra.mrb[6].mxu0 %v1193_v31 }
 0x330   :  { %v808_v33 = vpop.f32.mrb[6].mxu0 }
 0x331   :  { %v809_v34 = vadd.f32 %v838_v32, %v808_v33  ;;  %v961_v35 = vpop.f32.mrb[7].mxu0 }
 0x333   :  { %v839_v36 = vmul.f32 -1.442695, %v809_v34 }
 0x335   :  { %1194 = vpow2.f32 %v839_v36 }
 0x33f   :  { %v1195_v37 = vpop.eup %1194 }
 0x340   :  { %v815_v38 = vadd.f32 1.0, %v1195_v37 }
 0x342   :  { %1196 = vrcp.f32 %v815_v38 }
 0x34c   :  { %v1197_v39 = vpop.eup %1196 }
 0x34d   :  { %818 = vst [vmem:[#allocation10] sm:$0x3] %v1197_v39 }
 0x34e   :  { %1297 = shalt.err (!%p1294_p8)
}
 0x34f   :  { %s1298_s27 = scalar_lea.hbm %s1446_s6, 32 }
 0x350   :  { %p1299_p9 = scmp.ne.s32.totalorder %s1446_s6, %s1298_s27  ;;  %p1302_p10 = scmp.lt.u32.totalorder %s1298_s27, %s1446_s6 }
 0x352   :  { %p1304_p11 = pnand %p1302_p10, %p1299_p9 }
 0x354   :  { %1307 = shalt.err (!%p1304_p11)
}
 0x355   :  { %828 = dma.vmem_to_hbm [thread:$0]  %s826_s24, 32, %s1446_s6, [#allocation4]  }
 0x356   :  { %1314 = dma.done.wait [#allocation4], 32  }
 0x357   :  { %1315 = vsyncadd [#allocation4], 4294967264 }
 0x358   :  { %832 = vsyncpa [#allocation3], 1 }
 0x359   :  { %833 = vsyncpa [#allocation6], 1 }
 0x35a   :  { %834 = vsyncpa [#allocation9], 1 }
 0x35b   :  { %835 = vsyncpa [#allocation4], 1 }

</bundles_post_ra>
